<compile_context>
chip_gen: v7x
topology: tpu7x:2x2x1
jax: 0.10.0
libtpu: 0.0.40
codegen_flags: <defaults>
</compile_context>

<pallas_src>
import functools
import math

import jax
import jax.numpy as jnp
from jax.experimental import pallas as pl
from jax.experimental.pallas import tpu as pltpu

# Small, JSSEnv-like shapes
JOBS = 8                   # obs_space['real_obs'].shape[0]
FEATS = 7                  # obs_space['real_obs'].shape[1]
ACTION_MASK_DIM = JOBS + 1
HIDDEN = 32                # hidden_dim (extractor output_dim)
INPUT_DIM = JOBS * FEATS   # 56

# Lane-dense padded feature dims (multiples of 128) for the hidden/output columns only.
PAD_H1 = 128               # padded HIDDEN*2 (=64)
PAD_OUT = 128              # padded HIDDEN (=32)

TB_MAX = 2048              # max batch rows per grid step (amortizes per-step overhead)
JAX_BYPASS_B = 256         # below this, one fused XLA matmul beats pallas_call fixed cost


def _round_up(x, m):
    return ((x + m - 1) // m) * m


def _cdiv(a, b):
    return -(-a // b)


def _mlp_kernel(x_ref, w1_ref, b1_ref, w2_ref, b2_ref, o_ref):
    """Fused 2-layer MLP on one (tb, INPUT_DIM) bf16 activation tile.

    Weights/biases are VMEM-resident across all grid steps (constant index_map), so
    per-step HBM traffic is only the bf16 x tile in and the bf16 output tile out.
    """
    h = jnp.dot(x_ref[...], w1_ref[...], preferred_element_type=jnp.float32)
    h = jnp.maximum(h + b1_ref[...], 0.0)                 # f32 bias+ReLU on VPU
    y = jnp.dot(h.astype(jnp.bfloat16), w2_ref[...],
                preferred_element_type=jnp.float32)
    o_ref[...] = jnp.maximum(y + b2_ref[...], 0.0).astype(o_ref.dtype)  # bf16 lane-dense store


@functools.partial(jax.jit, static_argnames=("tb",))
def _mlp_pallas(x, w1, b1, w2, b2, *, tb):
    B_tiled = x.shape[0]
    grid = (B_tiled // tb,)
    cost = pl.CostEstimate(
        flops=2 * B_tiled * (INPUT_DIM * PAD_H1 + PAD_H1 * PAD_OUT),
        transcendentals=0,
        bytes_accessed=(B_tiled * INPUT_DIM * 2          # bf16 x in
                        + INPUT_DIM * PAD_H1 * 2         # bf16 W1
                        + PAD_H1 * 4                     # f32 b1
                        + PAD_H1 * PAD_OUT * 2           # bf16 W2
                        + PAD_OUT * 4                    # f32 b2
                        + B_tiled * PAD_OUT * 2),        # bf16 out
    )
    return pl.pallas_call(
        _mlp_kernel,
        out_shape=jax.ShapeDtypeStruct((B_tiled, PAD_OUT), jnp.bfloat16),
        grid=grid,
        in_specs=[
            pl.BlockSpec((tb, INPUT_DIM), lambda i: (i, 0)),       # streamed activations (56 lanes, full dim)
            pl.BlockSpec((INPUT_DIM, PAD_H1), lambda i: (0, 0)),   # resident W1
            pl.BlockSpec((1, PAD_H1), lambda i: (0, 0)),           # resident b1
            pl.BlockSpec((PAD_H1, PAD_OUT), lambda i: (0, 0)),     # resident W2
            pl.BlockSpec((1, PAD_OUT), lambda i: (0, 0)),          # resident b2
        ],
        out_specs=pl.BlockSpec((tb, PAD_OUT), lambda i: (i, 0)),
        compiler_params=pltpu.CompilerParams(
            dimension_semantics=("parallel",),
            vmem_limit_bytes=32 * 1024 * 1024,     # v7x-safe ceiling; tiles are only a few MiB
        ),
        cost_estimate=cost,
    )(x, w1, b1, w2, b2)


def init_params(key):
    """torch.nn.Linear-style init U(-1/sqrt(fan_in), +1/sqrt(fan_in)).

    W1 is stored unpadded along the contraction dim (INPUT_DIM=56) so the raw (B, 56)
    activations can be fed straight to the kernel; hidden/output columns are zero-padded
    to 128 lanes so all stores are lane-dense and the [:, :HIDDEN] slice stays exact.
    Weights are bf16 (streamed), biases f32."""
    k1, k2, k3, k4 = jax.random.split(key, 4)
    lim1 = 1.0 / math.sqrt(INPUT_DIM)
    lim2 = 1.0 / math.sqrt(HIDDEN * 2)
    w1 = jax.random.uniform(k1, (INPUT_DIM, HIDDEN * 2), jnp.float32, -lim1, lim1)
    b1 = jax.random.uniform(k2, (HIDDEN * 2,), jnp.float32, -lim1, lim1)
    w2 = jax.random.uniform(k3, (HIDDEN * 2, HIDDEN), jnp.float32, -lim2, lim2)
    b2 = jax.random.uniform(k4, (HIDDEN,), jnp.float32, -lim2, lim2)
    w1p = jnp.zeros((INPUT_DIM, PAD_H1), jnp.float32).at[:, :HIDDEN * 2].set(w1)
    b1p = jnp.zeros((1, PAD_H1), jnp.float32).at[0, :HIDDEN * 2].set(b1)
    w2p = jnp.zeros((PAD_H1, PAD_OUT), jnp.float32).at[:HIDDEN * 2, :HIDDEN].set(w2)
    b2p = jnp.zeros((1, PAD_OUT), jnp.float32).at[0, :HIDDEN].set(b2)
    return w1p.astype(jnp.bfloat16), b1p, w2p.astype(jnp.bfloat16), b2p


def mlp_features(flat_obs, params, *, force_kernel=False):
    """Dispatch: plain-JAX for small batches, batch-tiled Pallas kernel otherwise."""
    w1, b1, w2, b2 = params
    B, D = flat_obs.shape
    assert D == INPUT_DIM, f"expected flattened feature dim {INPUT_DIM}, got {D}"

    if B < JAX_BYPASS_B and not force_kernel:
        # Small batch: kernel launch / pipeline warm-up dominates; one fused XLA path.
        x = flat_obs.astype(jnp.bfloat16)
        h = jnp.maximum(jnp.dot(x, w1, preferred_element_type=jnp.float32) + b1, 0.0)
        y = jnp.maximum(jnp.dot(h.astype(jnp.bfloat16), w2,
                                preferred_element_type=jnp.float32) + b2, 0.0)
        return y[:, :HIDDEN]

    # Adaptive tile: n_steps grid steps of ~equal size, each a multiple of 16 rows,
    # so batch padding waste is bounded by ~16 rows per step (no huge padded tiles).
    n_steps = max(1, _cdiv(B, TB_MAX))
    tb = _round_up(_cdiv(B, n_steps), 16)
    B_tiled = n_steps * tb

    x = flat_obs.astype(jnp.bfloat16)
    if B_tiled != B:
        x = jnp.pad(x, ((0, B_tiled - B), (0, 0)))   # zero rows; row-independent, sliced off
    out = _mlp_pallas(x, w1, b1, w2, b2, tb=tb)
    return out[:B, :HIDDEN].astype(jnp.float32)


def gnn_feature_extractor_forward(obs_dict, params, *, force_kernel=False):
    """Equivalent of GNNFeatureExtractor.forward with use_gnn=False."""
    if isinstance(obs_dict, dict):
        real_obs = obs_dict["real_obs"]
        legal_actions = obs_dict["action_mask"]
    else:
        real_obs = obs_dict
        legal_actions = None

    batch_size = real_obs.shape[0] if real_obs.ndim > 2 else 1
    if real_obs.ndim == 3:
        flat_obs = real_obs.reshape(batch_size, -1)
    else:
        # Mirrors torch: a 2-D obs is treated as a single unbatched (jobs, feats)
        # observation and flattened to one row.
        flat_obs = real_obs.reshape(1, -1) if real_obs.ndim == 2 else real_obs

    features = mlp_features(flat_obs, params, force_kernel=force_kernel)
    return features, legal_actions


def _reference_forward(flat_obs, params):
    """Plain-JAX reference using the same bf16-streamed / f32-accumulated math."""
    w1, b1, w2, b2 = params
    x = flat_obs.astype(jnp.bfloat16)
    h = jnp.maximum(jnp.dot(x, w1, preferred_element_type=jnp.float32) + b1, 0.0)
    y = jnp.maximum(jnp.dot(h.astype(jnp.bfloat16), w2,
                            preferred_element_type=jnp.float32) + b2, 0.0)
    return y[:, :HIDDEN]


if __name__ == "__main__":
    key = jax.random.PRNGKey(0)
    kx, km, kp, kx2, kx3 = jax.random.split(key, 5)
    params = init_params(kp)

    # ---- Test 1: small batch=2 observation dict; force the Pallas kernel path ----
    real_obs = jax.random.uniform(kx, (2, JOBS, FEATS), dtype=jnp.float32)
    action_mask = (jax.random.uniform(km, (2, ACTION_MASK_DIM)) > 0.5).astype(jnp.float32)

    feats, mask = gnn_feature_extractor_forward(
        {"real_obs": real_obs, "action_mask": action_mask}, params, force_kernel=True
    )
    feats = jax.block_until_ready(feats)
    mask = jax.block_until_ready(mask)

    ref = _reference_forward(real_obs.reshape(2, -1), params)
    assert feats.shape == (2, HIDDEN)
    assert mask.shape == (2, ACTION_MASK_DIM)
    # bf16 output store costs ~2^-9 relative precision; well within 1e-2.
    assert jnp.allclose(feats, ref, atol=1e-2, rtol=1e-2)

    # ---- Test 2: medium batch, single grid step, no batch padding (tb == B) ----
    B2 = 528
    real_obs2 = jax.random.uniform(kx2, (B2, JOBS, FEATS), dtype=jnp.float32)
    feats2, _ = gnn_feature_extractor_forward(
        {"real_obs": real_obs2, "action_mask": None}, params)
    feats2 = jax.block_until_ready(feats2)
    ref2 = _reference_forward(real_obs2.reshape(B2, -1), params)
    assert feats2.shape == (B2, HIDDEN)
    assert jnp.allclose(feats2, ref2, atol=1e-2, rtol=1e-2)

    # ---- Test 3: larger batch exercises a multi-step grid + bounded batch padding ----
    B3 = 2100  # n_steps=2 -> tb=1056 -> B_tiled=2112 (only 12 padded rows)
    real_obs3 = jax.random.uniform(kx3, (B3, JOBS, FEATS), dtype=jnp.float32)
    feats3, _ = gnn_feature_extractor_forward(
        {"real_obs": real_obs3, "action_mask": None}, params)
    feats3 = jax.block_until_ready(feats3)
    ref3 = _reference_forward(real_obs3.reshape(B3, -1), params)
    assert feats3.shape == (B3, HIDDEN)
    assert jnp.allclose(feats3, ref3, atol=1e-2, rtol=1e-2)

    print("KERNEL_OK")
</pallas_src>

<mosaic_0001>
module attributes {stable_mosaic.version = 11 : i64} {
  func.func @_mlp_kernel(%arg0: i32, %arg1: memref<16x56xbf16, #tpu.memory_space<vmem>>, %arg2: memref<56x128xbf16, #tpu.memory_space<vmem>>, %arg3: memref<1x128xf32, #tpu.memory_space<vmem>>, %arg4: memref<128x128xbf16, #tpu.memory_space<vmem>>, %arg5: memref<1x128xf32, #tpu.memory_space<vmem>>, %arg6: memref<16x128xbf16, #tpu.memory_space<vmem>>) attributes {dimension_semantics = [#tpu.dimension_semantics<parallel>], iteration_bounds = array<i64: 1>, scalar_prefetch = 0 : i64, scratch_operands = 0 : i64, tpu.core_type = #tpu.core_type<tc>, window_params = [{transform_indices = @transform_0, window_bounds = array<i64: 16, 56>}, {pipeline_mode = #tpu.pipeline_mode<synchronous>, transform_indices = @transform_1, window_bounds = array<i64: 56, 128>}, {pipeline_mode = #tpu.pipeline_mode<synchronous>, transform_indices = @transform_2, window_bounds = array<i64: 1, 128>}, {pipeline_mode = #tpu.pipeline_mode<synchronous>, transform_indices = @transform_3, window_bounds = array<i64: 128, 128>}, {pipeline_mode = #tpu.pipeline_mode<synchronous>, transform_indices = @transform_4, window_bounds = array<i64: 1, 128>}, {transform_indices = @transform_5, window_bounds = array<i64: 16, 128>}]} {
    %c0 = arith.constant 0 : index
    %c0_0 = arith.constant 0 : index
    %0 = vector.load %arg1[%c0, %c0_0] : memref<16x56xbf16, #tpu.memory_space<vmem>>, vector<16x56xbf16>
    %c0_1 = arith.constant 0 : index
    %c0_2 = arith.constant 0 : index
    %1 = vector.load %arg2[%c0_1, %c0_2] : memref<56x128xbf16, #tpu.memory_space<vmem>>, vector<56x128xbf16>
    %cst = arith.constant dense<0.000000e+00> : vector<16x128xf32>
    %2 = tpu.matmul %0, %1, %cst {dimension_numbers = #tpu.dot_dimension_numbers<[1], [0], [0], [1], [0, 0, 1, 1], [], []>} : vector<16x56xbf16>, vector<56x128xbf16>, vector<16x128xf32> -> vector<16x128xf32>
    %c0_3 = arith.constant 0 : index
    %c0_4 = arith.constant 0 : index
    %3 = vector.load %arg3[%c0_3, %c0_4] : memref<1x128xf32, #tpu.memory_space<vmem>>, vector<1x128xf32>
    %4 = vector.broadcast %3 : vector<1x128xf32> to vector<16x128xf32>
    %5 = arith.addf %2, %4 : vector<16x128xf32>
    %cst_5 = arith.constant 0.000000e+00 : f32
    %6 = vector.broadcast %cst_5 : f32 to vector<16x128xf32>
    %7 = arith.maximumf %5, %6 : vector<16x128xf32>
    %8 = arith.truncf %7 : vector<16x128xf32> to vector<16x128xbf16>
    %c0_6 = arith.constant 0 : index
    %c0_7 = arith.constant 0 : index
    %9 = vector.load %arg4[%c0_6, %c0_7] : memref<128x128xbf16, #tpu.memory_space<vmem>>, vector<128x128xbf16>
    %cst_8 = arith.constant dense<0.000000e+00> : vector<16x128xf32>
    %10 = tpu.matmul %8, %9, %cst_8 {dimension_numbers = #tpu.dot_dimension_numbers<[1], [0], [0], [1], [0, 0, 1, 1], [], []>} : vector<16x128xbf16>, vector<128x128xbf16>, vector<16x128xf32> -> vector<16x128xf32>
    %c0_9 = arith.constant 0 : index
    %c0_10 = arith.constant 0 : index
    %11 = vector.load %arg5[%c0_9, %c0_10] : memref<1x128xf32, #tpu.memory_space<vmem>>, vector<1x128xf32>
    %12 = vector.broadcast %11 : vector<1x128xf32> to vector<16x128xf32>
    %13 = arith.addf %10, %12 : vector<16x128xf32>
    %cst_11 = arith.constant 0.000000e+00 : f32
    %14 = vector.broadcast %cst_11 : f32 to vector<16x128xf32>
    %15 = arith.maximumf %13, %14 : vector<16x128xf32>
    %16 = arith.truncf %15 : vector<16x128xf32> to vector<16x128xbf16>
    %c0_12 = arith.constant 0 : index
    %c0_13 = arith.constant 0 : index
    %17 = vector.load %arg6[%c0_12, %c0_13] : memref<16x128xbf16, #tpu.memory_space<vmem>>, vector<16x128xbf16>
    tpu.vector_store %arg6[%c0_12, %c0_13], %16 {strides = array<i32>} : memref<16x128xbf16, #tpu.memory_space<vmem>>, vector<16x128xbf16>,
    return
  }
  func.func @transform_0(%arg0: i32) -> (i32, i32) {
    %c0_i32 = arith.constant 0 : i32
    %c0_i32_0 = arith.constant 0 : i32
    return %arg0, %c0_i32 : i32, i32
  }
  func.func @transform_1(%arg0: i32) -> (i32, i32) {
    %c0_i32 = arith.constant 0 : i32
    %c0_i32_0 = arith.constant 0 : i32
    %c0_i32_1 = arith.constant 0 : i32
    return %c0_i32, %c0_i32_0 : i32, i32
  }
  func.func @transform_2(%arg0: i32) -> (i32, i32) {
    %c0_i32 = arith.constant 0 : i32
    %c0_i32_0 = arith.constant 0 : i32
    %c0_i32_1 = arith.constant 0 : i32
    return %c0_i32, %c0_i32_0 : i32, i32
  }
  func.func @transform_3(%arg0: i32) -> (i32, i32) {
    %c0_i32 = arith.constant 0 : i32
    %c0_i32_0 = arith.constant 0 : i32
    %c0_i32_1 = arith.constant 0 : i32
    return %c0_i32, %c0_i32_0 : i32, i32
  }
  func.func @transform_4(%arg0: i32) -> (i32, i32) {
    %c0_i32 = arith.constant 0 : i32
    %c0_i32_0 = arith.constant 0 : i32
    %c0_i32_1 = arith.constant 0 : i32
    return %c0_i32, %c0_i32_0 : i32, i32
  }
  func.func @transform_5(%arg0: i32) -> (i32, i32) {
    %c0_i32 = arith.constant 0 : i32
    %c0_i32_0 = arith.constant 0 : i32
    return %arg0, %c0_i32 : i32, i32
  }
}

</mosaic_0001>

<bundles_post_ra>
// kernel: _mlp_pallas.1
= control target key start
LH: loop header
LB: loop body
LE: loop exit
PB: predicated region body
PF: predicated region fallthrough
CT: control target
= control target key end

     0   :  { %10 = vsyncpa [#allocation3], 0  ;;  %s596_s0 = inlined_call_operand.hbm [shape: bf16[16,56], index: 0, kind: input, shape index: {}]   ;;  %s597_s1 = inlined_call_operand.hbm [shape: bf16[56,128], index: 1, kind: input, shape index: {}]   ;;  %s598_s2 = inlined_call_operand.vmem [shape: f32[1,128], index: 2, kind: input, shape index: {}]   ;;  %s599_s3 = inlined_call_operand.hbm [shape: bf16[128,128], index: 3, kind: input, shape index: {}]   ;;  %s600_s4 = inlined_call_operand.vmem [shape: f32[1,128], index: 4, kind: input, shape index: {}]   ;;  %s601_s5 = inlined_call_operand.hbm [shape: bf16[16,128], index: 5, kind: output, shape index: {}]  }
   0x1   :  { %11 = vsyncpa [#allocation6], 0 }
   0x2   :  { %12 = vsyncpa [#allocation4], 0  ;;  %s485_s18 = smov [#allocation5]   ;;  %s486_s20 = smov [#allocation2]  }
   0x3   :  { %s30_s19 = sshll.u32 %s485_s18, 4  ;;  %s18_s21 = sshll.u32 %s486_s20, 4  ;;  %s31_s19 = int_to_ptr.vmem [resolvable:$true] %s30_s19  ;;  %s523_s21 = int_to_ptr.vmem [resolvable:$true] %s18_s21 }
   0x4   :  { %s391_s24 = scalar_lea.hbm %s597_s1, 448 }
   0x5   :  { %p392_p0 = scmp.ne.s32.totalorder %s597_s1, %s391_s24  ;;  %p395_p1 = scmp.lt.u32.totalorder %s391_s24, %s597_s1 }
   0x7   :  { %p397_p2 = pnand %p395_p1, %p392_p0 }
   0x9   :  { %400 = shalt.err (!%p397_p2)
}
   0xa   :  { %s401_s29 = scalar_lea.vmem %s31_s19, 448  ;;  %p406_p4 = scmp.lt.s32.totalorder %s31_s19, %s31_s19 }
   0xb   :  { %p402_p3 = scmp.ne.s32.totalorder %s31_s19, %s401_s29  ;;  %p407_p5 = scmp.lt.s32.totalorder %s401_s29, %s401_s29 }
   0xd   :  { %p408_p6 = por %p407_p5, %p406_p4 }
   0xf   :  { %p409_p7 = pnand %p408_p6, %p402_p3 }
  0x11   :  { %412 = shalt.err (!%p409_p7)
}
  0x12   :  { %s487_s30 = smov 64   ;;  %s488_s6 = smov 4  }
  0x13   :  { %36 = dma.hbm_to_vmem [thread:$0]  %s597_s1, 448, %s31_s19, [#allocation6], %s487_s30, %s487_s30, %s488_s6  }
  0x14   :  { %s413_s11 = scalar_lea.hbm %s596_s0, 128 }
  0x15   :  { %p414_p8 = scmp.ne.s32.totalorder %s596_s0, %s413_s11  ;;  %p417_p9 = scmp.lt.u32.totalorder %s413_s11, %s596_s0 }
  0x17   :  { %p419_p10 = pnand %p417_p9, %p414_p8 }
  0x19   :  { %422 = shalt.err (!%p419_p10)
}
  0x1a   :  { %s423_s16 = scalar_lea.vmem %s523_s21, 128  ;;  %p428_p12 = scmp.lt.s32.totalorder %s523_s21, %s523_s21 }
  0x1b   :  { %p424_p11 = scmp.ne.s32.totalorder %s523_s21, %s423_s16  ;;  %p429_p13 = scmp.lt.s32.totalorder %s423_s16, %s423_s16 }
  0x1d   :  { %p430_p0 = por %p429_p13, %p428_p12 }
  0x1f   :  { %p431_p1 = pnand %p430_p0, %p424_p11 }
  0x21   :  { %434 = shalt.err (!%p431_p1)
}
  0x22   :  { %24 = dma.hbm_to_vmem [thread:$0]  %s596_s0, 128, %s523_s21, [#allocation3], %s487_s30, %s487_s30, %s488_s6  }
  0x23   :  { %s489_s18 = smov [#allocation7]   ;;  %s435_s23 = scalar_lea.hbm %s599_s3, 1024 }
  0x24   :  { %s44_s19 = sshll.u32 %s489_s18, 4  ;;  %p436_p2 = scmp.ne.s32.totalorder %s599_s3, %s435_s23  ;;  %s45_s19 = int_to_ptr.vmem [resolvable:$true] %s44_s19 }
  0x25   :  { %p439_p3 = scmp.lt.u32.totalorder %s435_s23, %s599_s3 }
  0x27   :  { %p441_p4 = pnand %p439_p3, %p436_p2 }
  0x29   :  { %444 = shalt.err (!%p441_p4)
}
  0x2a   :  { %s445_s28 = scalar_lea.vmem %s45_s19, 1024  ;;  %p450_p6 = scmp.lt.s32.totalorder %s45_s19, %s45_s19 }
  0x2b   :  { %p446_p5 = scmp.ne.s32.totalorder %s45_s19, %s445_s28  ;;  %p451_p7 = scmp.lt.s32.totalorder %s445_s28, %s445_s28 }
  0x2d   :  { %p452_p8 = por %p451_p7, %p450_p6 }
  0x2f   :  { %p453_p9 = pnand %p452_p8, %p446_p5 }
  0x31   :  { %456 = shalt.err (!%p453_p9)
}
  0x32   :  { %50 = dma.hbm_to_vmem [thread:$0]  %s599_s3, 1024, %s45_s19, [#allocation6], %s487_s30, %s487_s30, %s488_s6  }
  0x33   :  { %479 = dma.done.wait [#allocation3], 128  }
  0x34   :  { %480 = vsyncadd [#allocation3], 4294967168 }
  0x35   :  { %481 = dma.done.wait [#allocation6], 1472  }
  0x36   :  { %482 = vsyncadd [#allocation6], 4294965824  ;;  %v490_v0 = vmov 0.0   ;;  %vm491_vm0 = vmmov 0   ;;  %v378_v1 = vld [vmem:[#allocation5] sm:$0xff]   ;;  %v379_v2 = vld [vmem:[#allocation5 + $0x8] sm:$0xff]  }
  0x37   :  { %338 = vmatprep.subr.bf16.mxu0 %v490_v0  ;;  %346 = vmatprep.mubr.msk.bf16.mxu0 %vm491_vm0, %v490_v0  ;;  %v380_v3 = vld [vmem:[#allocation5 + $0x10] sm:$0xff]   ;;  %v383_v4 = vld [vmem:[#allocation7] sm:$0xff]   ;;  %v381_v5 = vld [vmem:[#allocation5 + $0x18] ss:$0 sps:$4 sm:$0xff]   ;;  %vm109_vm1 = vcmask 1043456   ;;  %vm105_vm2 = vcmask 457728  }
  0x38   :  { %350 = vmatprep.subr.bf16.mxu1 %v490_v0  ;;  %366 = vmatprep.mubr.msk.bf16.mxu1 %vm491_vm0, %v490_v0  ;;  %v384_v6 = vld [vmem:[#allocation7 + $0x8] sm:$0xff]   ;;  %v111_v7 = vsel %vm109_vm1, %v381_v5, 0  ;;  %v385_v8 = vld [vmem:[#allocation7 + $0x10] sm:$0xff]   ;;  %v382_v9 = vld [vmem:[#allocation2] sm:$0xff]  }
  0x39   :  { %339 = vmatpush3.bf16.msra.mxu0 %v378_v1  ;;  %351 = vmatpush3.bf16.msra.mxu1 %v383_v4  ;;  %v386_v10 = vld [vmem:[#allocation7 + $0x18] sm:$0xff]   ;;  %v387_v11 = vld [vmem:[#allocation7 + $0x20] sm:$0xff]   ;;  %v388_v12 = vld [vmem:[#allocation7 + $0x28] sm:$0xff]  }
  0x3a   :  { %340 = vmatprep.subr.bf16.mxu0 %v490_v0  ;;  %352 = vmatprep.subr.bf16.mxu1 %v490_v0  ;;  %v389_v13 = vld [vmem:[#allocation7 + $0x30] sm:$0xff]   ;;  %v390_v14 = vld [vmem:[#allocation7 + $0x38] sm:$0xff]  }
  0x3b   :  { %v299_v15 = vld [vmem:[%s598_s2] ss:$0 sm:$0xff]  ;;  %s492_s2 = smov [#allocation8]  }
  0x3c   :  { %v306_v25 = vld [vmem:[%s600_s4] ss:$0 sm:$0xff]  ;;  %s286_s9 = sshll.u32 %s492_s2, 4  ;;  %s287_s9 = int_to_ptr.vmem [resolvable:$true] %s286_s9 }
  0x3d   :  { %341 = vmatpush3.bf16.msra.mxu0 %v379_v2  ;;  %353 = vmatpush3.bf16.msra.mxu1 %v384_v6  ;;  %s457_s10 = scalar_lea.vmem %s287_s9, 128  ;;  %p462_p11 = scmp.lt.s32.totalorder %s287_s9, %s287_s9 }
  0x3e   :  { %342 = vmatprep.subr.bf16.mxu0 %v490_v0  ;;  %354 = vmatprep.subr.bf16.mxu1 %v490_v0  ;;  %p458_p10 = scmp.ne.s32.totalorder %s287_s9, %s457_s10  ;;  %p463_p12 = scmp.lt.s32.totalorder %s457_s10, %s457_s10 }
  0x40   :  { %p464_p13 = por %p463_p12, %p462_p11 }
  0x41   :  { %343 = vmatpush3.bf16.msra.mxu0 %v380_v3  ;;  %355 = vmatpush3.bf16.msra.mxu1 %v385_v8 }
  0x42   :  { %344 = vmatprep.subr.bf16.mxu0 %v490_v0  ;;  %356 = vmatprep.subr.bf16.mxu1 %v490_v0  ;;  %p465_p0 = pnand %p464_p13, %p458_p10 }
  0x45   :  { %345 = vmatpush3.bf16.msra.mxu0 %v111_v7  ;;  %357 = vmatpush3.bf16.msra.mxu1 %v386_v10 }
  0x46   :  { %358 = vmatprep.subr.bf16.mxu1 %v490_v0 }
  0x48   :  { %347 = vmatmul.mubr.msk.bf16.vlgmr.msra.gmra.mrb[0].mxu0 %vm105_vm2, %v382_v9 }
  0x49   :  { %359 = vmatpush3.bf16.msra.mxu1 %v387_v11 }
  0x4a   :  { %360 = vmatprep.subr.bf16.mxu1 %v490_v0 }
  0x4d   :  { %361 = vmatpush3.bf16.msra.mxu1 %v388_v12 }
  0x4e   :  { %362 = vmatprep.subr.bf16.mxu1 %v490_v0 }
  0x51   :  { %363 = vmatpush3.bf16.msra.mxu1 %v389_v13 }
  0x52   :  { %364 = vmatprep.subr.bf16.mxu1 %v490_v0 }
  0x55   :  { %365 = vmatpush3.bf16.msra.mxu1 %v390_v14 }
 0x11b   :  { %v147_v16 = vpop.f32.mrb[0].mxu0 }
 0x11c   :  { %v148_v17 = vadd.f32 %v299_v15, %v147_v16  ;;  %v348_v18 = vpop.f32.mrb[1].mxu0 }
 0x11d   :  { %v150_v19 = vpop.f32.mrb[2].mxu0 }
 0x11e   :  { %v151_v20 = vadd.f32 %v299_v15, %v150_v19  ;;  %v349_v21 = vpop.f32.mrb[3].mxu0  ;;  %v154_v22 = vmax.f32 %v148_v17, 0.0 }
 0x120   :  { %v155_v23 = vmax.f32 %v151_v20, 0.0 }
 0x122   :  { %v156_v24 = vpack.c.bf16 %v155_v23, %v154_v22 }
 0x124   :  { %367 = vmatmul.mubr.bf16.vlgmr.msra.gmra.mrb[0].mxu1 %v156_v24 }
 0x1f7   :  { %v262_v26 = vpop.f32.mrb[0].mxu1 }
 0x1f8   :  { %v263_v27 = vadd.f32 %v306_v25, %v262_v26  ;;  %v368_v28 = vpop.f32.mrb[1].mxu1 }
 0x1f9   :  { %v265_v29 = vpop.f32.mrb[2].mxu1 }
 0x1fa   :  { %v266_v30 = vadd.f32 %v306_v25, %v265_v29  ;;  %v369_v31 = vpop.f32.mrb[3].mxu1  ;;  %v269_v32 = vmax.f32 %v263_v27, 0.0 }
 0x1fc   :  { %v270_v33 = vmax.f32 %v266_v30, 0.0 }
 0x1fe   :  { %v322_v34 = vpack.c.bf16 %v270_v33, %v269_v32 }
 0x200   :  { %323 = vst [vmem:[#allocation8] sm:$0xff] %v322_v34  }
 0x201   :  { %468 = shalt.err (!%p465_p0)
}
 0x202   :  { %s469_s12 = scalar_lea.hbm %s601_s5, 128 }
 0x203   :  { %p470_p1 = scmp.ne.s32.totalorder %s601_s5, %s469_s12  ;;  %p473_p2 = scmp.lt.u32.totalorder %s469_s12, %s601_s5 }
 0x205   :  { %p475_p3 = pnand %p473_p2, %p470_p1 }
 0x207   :  { %478 = shalt.err (!%p475_p3)
}
 0x208   :  { %292 = dma.vmem_to_hbm [thread:$0]  %s287_s9, 128, %s601_s5, [#allocation4], %s487_s30, %s487_s30, %s488_s6  }
 0x209   :  { %483 = dma.done.wait [#allocation4], 128  }
 0x20a   :  { %484 = vsyncadd [#allocation4], 4294967168 }
 0x20b   :  { %296 = vsyncpa [#allocation3], 1 }
 0x20c   :  { %297 = vsyncpa [#allocation6], 1 }
 0x20d   :  { %298 = vsyncpa [#allocation4], 1 }

</bundles_post_ra>
